<compile_context>
chip_gen: v7x
topology: tpu7x:2x2x1
jax: 0.10.0
libtpu: 0.0.40
codegen_flags: <defaults>
</compile_context>

<pallas_src>
import jax
import jax.numpy as jnp
from jax.experimental import pallas as pl
from jax.experimental.pallas import tpu as pltpu


def _pos_embed_kernel(w_ref, out_ref):
    # w_ref   : (1, f_tile)       positional-slice tile (lane-dense)
    # out_ref : (b_tile, f_tile)  output slab for this grid step
    out_ref[...] = jnp.broadcast_to(w_ref[...], out_ref.shape)


def _vmem_capacity_bytes() -> int:
    """Generation-aware VMEM capacity; conservative (v7x) fallback."""
    try:
        info = pltpu.get_tpu_info()
        cap = getattr(info, "vmem_capacity_bytes", None)
        if cap:
            return int(cap)
    except Exception:
        pass
    return 64 << 20  # v7x per-TC VMEM (smallest of v5e/v6e/v7x)


def pos_embed_tokens(
    tokens: jax.Array,
    W_pos: jax.Array,
    pos_offset: int = 0,
    *,
    min_pallas_bytes: int = 1 << 20,
) -> jax.Array:
    """Pallas equivalent of PosEmbedTokens.forward.

    tokens : [batch, pos]  (int dtype; values unused, only shape)
    W_pos  : [n_ctx, d_model]
    returns: [batch, pos, d_model] with dtype of W_pos
    """
    batch, seq_len = tokens.shape
    n_ctx, d_model = W_pos.shape
    assert pos_offset + seq_len <= n_ctx, "pos_offset + seq_len exceeds n_ctx"

    dtype = W_pos.dtype
    itemsize = jnp.dtype(dtype).itemsize
    feat = seq_len * d_model
    out_bytes = batch * feat * itemsize

    pos_slice = W_pos[pos_offset:pos_offset + seq_len]  # static slice (free)

    # Tiny problems: plain XLA broadcast fuses into the consumer and beats the
    # custom-call launch + per-grid-step overhead.
    if out_bytes < min_pallas_bytes:
        return jnp.broadcast_to(pos_slice[None, :, :], (batch, seq_len, d_model))

    # Lane-dense flattened view of the positional slice.
    w_flat = pos_slice.reshape(1, feat)

    # ---- Generation-aware tile sizing -------------------------------------
    vmem_cap = _vmem_capacity_bytes()
    vmem_budget = max(8 << 20, vmem_cap - (16 << 20))  # headroom for scratch
    # 2x slab (double-buffered out) + 2x input tile must fit with slack.
    target_slab = max(1 << 20, min(16 << 20, (vmem_budget - (4 << 20)) // 4))

    lane = 128
    sub = 8 * max(1, 4 // itemsize)  # sublane group: 8 f32 / 16 bf16 / 32 int8
    row_bytes = feat * itemsize
    min_rows = min(batch, sub)

    if min_rows * row_bytes > target_slab:
        # Even one sublane-group of full-width rows exceeds the slab target:
        # tile the flattened feat dim in multiples of 128 lanes (unmasked vst).
        b_tile = min_rows
        f_tile = max(lane, (target_slab // (b_tile * itemsize)) // lane * lane)
        f_tile = min(f_tile, feat)
    else:
        f_tile = feat
        b_tile = max(min_rows, target_slab // row_bytes)
        if b_tile >= batch:
            b_tile = batch
        else:
            b_tile = max(sub, (b_tile // sub) * sub)  # sublane-aligned tile

    grid = (pl.cdiv(batch, b_tile), pl.cdiv(feat, f_tile))

    slab_bytes = b_tile * f_tile * itemsize
    in_bytes = f_tile * itemsize
    vmem_limit = max(
        4 << 20,
        min(2 * slab_bytes + 2 * in_bytes + (2 << 20), vmem_budget),
    )

    out_flat = pl.pallas_call(
        _pos_embed_kernel,
        out_shape=jax.ShapeDtypeStruct((batch, feat), dtype),
        grid=grid,
        in_specs=[
            # Small input tile; constant along the batch axis (stays resident
            # when f_tile == feat).
            pl.BlockSpec((1, f_tile), lambda b, f: (0, f)),
        ],
        out_specs=pl.BlockSpec((b_tile, f_tile), lambda b, f: (b, f)),
        compiler_params=pltpu.CompilerParams(
            dimension_semantics=("parallel", "parallel"),
            vmem_limit_bytes=vmem_limit,
        ),
        cost_estimate=pl.CostEstimate(
            flops=0,
            transcendentals=0,
            bytes_accessed=out_bytes + feat * itemsize,
        ),
    )(w_flat)

    # Contiguous reshape back to [batch, pos, d_model] (free).
    return out_flat.reshape(batch, seq_len, d_model)


if __name__ == "__main__":
    # Small shapes consistent with the module: cfg.n_ctx=16, cfg.d_model=32.
    batch, seq_len = 2, 8
    n_ctx, d_model = 16, 32
    pos_offset = 3

    key = jax.random.PRNGKey(0)
    k_w, k_tok = jax.random.split(key)

    W_pos = jax.random.normal(k_w, (n_ctx, d_model), dtype=jnp.float32)
    tokens = jax.random.randint(k_tok, (batch, seq_len), 0, 100, dtype=jnp.int32)

    # Force the Pallas path even at demo size (the default wrapper would
    # short-circuit this tiny shape to plain XLA broadcast).
    out = pos_embed_tokens(tokens, W_pos, pos_offset=pos_offset, min_pallas_bytes=0)
    out = jax.block_until_ready(out)

    ref = jnp.broadcast_to(
        W_pos[pos_offset:pos_offset + seq_len][None, :, :],
        (batch, seq_len, d_model),
    )
    assert out.shape == (batch, seq_len, d_model)
    assert out.dtype == W_pos.dtype
    assert jnp.array_equal(out, ref)

    # Default (auto) path exercises the tiny-shape short-circuit.
    out_auto = jax.block_until_ready(
        pos_embed_tokens(tokens, W_pos, pos_offset=pos_offset)
    )
    assert jnp.array_equal(out_auto, ref)

    print("KERNEL_OK")
</pallas_src>

<mosaic_0001>
module attributes {stable_mosaic.version = 11 : i64} {
  func.func @_pos_embed_kernel(%arg0: i32, %arg1: i32, %arg2: memref<1x256xf32, #tpu.memory_space<vmem>>, %arg3: memref<2x256xf32, #tpu.memory_space<vmem>>) attributes {dimension_semantics = [#tpu.dimension_semantics<parallel>, #tpu.dimension_semantics<parallel>], iteration_bounds = array<i64: 1, 1>, scalar_prefetch = 0 : i64, scratch_operands = 0 : i64, tpu.core_type = #tpu.core_type<tc>, window_params = [{transform_indices = @transform_0, window_bounds = array<i64: 1, 256>}, {transform_indices = @transform_1, window_bounds = array<i64: 2, 256>}]} {
    %c0 = arith.constant 0 : index
    %c0_0 = arith.constant 0 : index
    %0 = vector.load %arg2[%c0, %c0_0] : memref<1x256xf32, #tpu.memory_space<vmem>>, vector<1x256xf32>
    %1 = vector.shape_cast %0 : vector<1x256xf32> to vector<1x256xf32>
    %2 = vector.broadcast %1 : vector<1x256xf32> to vector<2x256xf32>
    %c0_1 = arith.constant 0 : index
    %c0_2 = arith.constant 0 : index
    %3 = vector.load %arg3[%c0_1, %c0_2] : memref<2x256xf32, #tpu.memory_space<vmem>>, vector<2x256xf32>
    tpu.vector_store %arg3[%c0_1, %c0_2], %2 {strides = array<i32>} : memref<2x256xf32, #tpu.memory_space<vmem>>, vector<2x256xf32>,
    return
  }
  func.func @transform_0(%arg0: i32, %arg1: i32) -> (i32, i32) {
    %c0_i32 = arith.constant 0 : i32
    %c0_i32_0 = arith.constant 0 : i32
    return %c0_i32, %arg1 : i32, i32
  }
  func.func @transform_1(%arg0: i32, %arg1: i32) -> (i32, i32) {
    %c0_i32 = arith.constant 0 : i32
    return %arg0, %arg1 : i32, i32
  }
}

</mosaic_0001>

<bundles_post_ra>
// kernel: tpu_custom_call.1
= control target key start
LH: loop header
LB: loop body
LE: loop exit
PB: predicated region body
PF: predicated region fallthrough
CT: control target
= control target key end

     0   :  { %6 = vsyncpa [#allocation3], 0  ;;  %s143_s0 = inlined_call_operand.hbm [shape: f32[1,256], index: 0, kind: input, shape index: {}]   ;;  %s144_s1 = inlined_call_operand.hbm [shape: f32[2,256], index: 1, kind: output, shape index: {}]  }
   0x1   :  { %7 = vsyncpa [#allocation4], 0  ;;  %s107_s6 = smov [#allocation2]   ;;  %s59_s10 = scalar_lea.hbm %s143_s0, 32 }
   0x2   :  { %s14_s7 = sshll.u32 %s107_s6, 4  ;;  %p60_p0 = scmp.ne.s32.totalorder %s143_s0, %s59_s10  ;;  %s15_s7 = int_to_ptr.vmem [resolvable:$true] %s14_s7 }
   0x3   :  { %p63_p1 = scmp.lt.u32.totalorder %s59_s10, %s143_s0 }
   0x5   :  { %p65_p2 = pnand %p63_p1, %p60_p0 }
   0x7   :  { %68 = shalt.err (!%p65_p2)
}
   0x8   :  { %s69_s15 = scalar_lea.vmem %s15_s7, 32  ;;  %p74_p4 = scmp.lt.s32.totalorder %s15_s7, %s15_s7 }
   0x9   :  { %p70_p3 = scmp.ne.s32.totalorder %s15_s7, %s69_s15  ;;  %p75_p5 = scmp.lt.s32.totalorder %s69_s15, %s69_s15 }
   0xb   :  { %p76_p6 = por %p75_p5, %p74_p4 }
   0xd   :  { %p77_p7 = pnand %p76_p6, %p70_p3 }
   0xf   :  { %80 = shalt.err (!%p77_p7)
}
  0x10   :  { %17 = dma.hbm_to_vmem [thread:$0]  %s143_s0, 32, %s15_s7, [#allocation3]  }
  0x11   :  { %103 = dma.done.wait [#allocation3], 32  }
  0x12   :  { %104 = vsyncadd [#allocation3], 4294967264  ;;  %v23_v0 = vlaneseq  ;;  %v21_v4 = vld [vmem:[#allocation2] sm:$0x3]  ;;  %s108_s18 = smov [#allocation5]  }
  0x13   :  { %s47_s19 = sshll.u32 %s108_s18, 4  ;;  %s48_s19 = int_to_ptr.vmem [resolvable:$true] %s47_s19 }
  0x14   :  { %v24_v1 = vshrl.u32 %v23_v0, 7  ;;  %s81_s20 = scalar_lea.vmem %s48_s19, 64  ;;  %p86_p9 = scmp.lt.s32.totalorder %s48_s19, %s48_s19 }
  0x15   :  { %p82_p8 = scmp.ne.s32.totalorder %s48_s19, %s81_s20  ;;  %p87_p10 = scmp.lt.s32.totalorder %s81_s20, %s81_s20 }
  0x16   :  { %v25_v2 = vsub.s32 0, %v24_v1  ;;  %v29_v3 = vsub.s32 1, %v24_v1 }
  0x17   :  { %p88_p11 = por %p87_p10, %p86_p9 }
  0x18   :  { %v26_v5 = vrot.slane %v21_v4, %v25_v2  ;;  %v30_v6 = vrot.slane %v21_v4, %v29_v3 }
  0x19   :  { %p89_p12 = pnand %p88_p11, %p82_p8 }
  0x1a   :  { %v31_v7 = vcombine.low %v26_v5, %v30_v6 }
  0x1c   :  { %56 = vst.sshfl [vmem:[#allocation5] sm:$0x33 pattern:$0x76325410] %v31_v7 }
  0x1d   :  { %92 = shalt.err (!%p89_p12)
}
  0x1e   :  { %s93_s22 = scalar_lea.hbm %s144_s1, 64 }
  0x1f   :  { %p94_p13 = scmp.ne.s32.totalorder %s144_s1, %s93_s22  ;;  %p97_p0 = scmp.lt.u32.totalorder %s93_s22, %s144_s1 }
  0x21   :  { %p99_p1 = pnand %p97_p0, %p94_p13 }
  0x23   :  { %102 = shalt.err (!%p99_p1)
}
  0x24   :  { %50 = dma.vmem_to_hbm [thread:$0]  %s48_s19, 64, %s144_s1, [#allocation4]  }
  0x25   :  { %105 = dma.done.wait [#allocation4], 64  }
  0x26   :  { %106 = vsyncadd [#allocation4], 4294967232 }
  0x27   :  { %54 = vsyncpa [#allocation3], 1 }
  0x28   :  { %55 = vsyncpa [#allocation4], 1 }

</bundles_post_ra>
